<compile_context>
chip_gen: v6e
topology: v6e:2x2x1
jax: 0.10.0
libtpu: 0.0.40
codegen_flags: <defaults>
</compile_context>

<pallas_src>
import math

import jax
import jax.numpy as jnp
from jax import lax
from jax.experimental import pallas as pl
from jax.experimental.pallas import tpu as pltpu

EPS = 1e-5
_SUBLANE = 8                              # channel-tile alignment (f32 sublane packing)
_LIVE_BYTES_BUDGET = 8 * 1024 * 1024      # target per-step VMEM live set (incl. f32 temps)


# ---------------------------------------------------------------------------
# In-kernel math helpers
# ---------------------------------------------------------------------------
def _sigmoid(x):
    # exp(-x) runs on the EUP; the divide stays exact.  (pl.reciprocal(...,
    # approx=True) would free one more VPU op/element but costs ~1e-3 accuracy.)
    return 1.0 / (1.0 + jnp.exp(-x))


def _row_stats(x):
    """Two-pass mean / biased variance over the last axis (matches InstanceNorm2d)."""
    inv_n = 1.0 / x.shape[-1]
    mean = jnp.sum(x, axis=-1, keepdims=True) * inv_n
    centered = x - mean
    var = jnp.sum(centered * centered, axis=-1, keepdims=True) * inv_n
    return centered, var


def _head_outputs(x1, out_dtype):
    """out1 = sigmoid(IN(x1)) * x1 and the x1n-derived half of out2, for one block.

    The second InstanceNorm over x1n is folded analytically:
      mean(x1n) = 0,  var(x1n) = var1 / (var1 + eps)
      IN(x1n)   = (x1 - mean1) * rsqrt(var1*(1+eps) + eps^2)
    so no second reduction sweep over HW is needed.
    """
    centered, var = _row_stats(x1)
    x1n = centered * lax.rsqrt(var + EPS)
    out1 = _sigmoid(x1n) * x1
    head = centered * lax.rsqrt(var * (1.0 + EPS) + EPS * EPS)
    out2_head = _sigmoid(head) * head
    return out1.astype(out_dtype), out2_head.astype(out_dtype)


def _tail_outputs(x2, out_dtype):
    """sigmoid(IN(x2)) * IN(x2) for one block (the x2-derived half of out2)."""
    centered, var = _row_stats(x2)
    tail = centered * lax.rsqrt(var + EPS)
    return (_sigmoid(tail) * tail).astype(out_dtype)


# ---------------------------------------------------------------------------
# Kernels
# ---------------------------------------------------------------------------
def _nam_fullc_kernel(x1_ref, x2_ref, out1_ref, out2_ref):
    """Fallback path: one grid step covers all channels of one batch tile.

    Used when C / C2 are not sublane aligned (e.g. the toy C=4 config), so the
    out2 channel split cannot be placed on a block boundary.
    """
    c = x1_ref.shape[1]
    x1 = x1_ref[...].astype(jnp.float32)
    out1, out2_head = _head_outputs(x1, out1_ref.dtype)
    out1_ref[...] = out1
    out2_ref[:, :c, :] = out2_head
    # x2 work starts only after the x1 temporaries die (keeps the live set small).
    x2 = x2_ref[...].astype(jnp.float32)
    out2_ref[:, c:, :] = _tail_outputs(x2, out2_ref.dtype)


def _make_split_kernel(j1):
    """Channel-tiled kernel: grid axis 1 walks out2's channel blocks.

    Blocks j <  j1 are 'head' blocks (derived from x1): write out1 and out2.
    Blocks j >= j1 are 'tail' blocks (derived from x2): write out2 only;
    out1's resident block from step j1-1 is flushed unchanged.
    """
    def kernel(x1_ref, x2_ref, out1_ref, out2_ref):
        j = pl.program_id(1)

        @pl.when(j < j1)
        def _head():
            x1 = x1_ref[...].astype(jnp.float32)
            out1, out2_head = _head_outputs(x1, out1_ref.dtype)
            out1_ref[...] = out1
            out2_ref[...] = out2_head

        @pl.when(j >= j1)
        def _tail():
            x2 = x2_ref[...].astype(jnp.float32)
            out2_ref[...] = _tail_outputs(x2, out2_ref.dtype)

    return kernel


# ---------------------------------------------------------------------------
# Tiling / compiler-parameter planning
# ---------------------------------------------------------------------------
def _divisors(n):
    return [d for d in range(1, n + 1) if n % d == 0]


def _vmem_capacity_bytes():
    try:
        cap = getattr(pltpu.get_tpu_info(), "vmem_capacity_bytes", None)
        if cap:
            return int(cap)
    except Exception:
        pass
    return 64 * 1024 * 1024  # conservative: v7x physical VMEM


def _plan_channel_tiles(n, c, c2, hw, itemsize):
    """Return (ct, tb, live_bytes) for the channel-tiled path, or None when the
    channel counts are not sublane aligned (the out2 head/tail split must fall
    on a block boundary)."""
    g = math.gcd(c, c2)
    ct_opts = [d for d in _divisors(g) if d % _SUBLANE == 0]
    if not ct_opts:
        return None
    # Live bytes per element of a (tb, ct, hw) block:
    #   4 blocks (x1, x2, out1, out2) x double-buffer in the I/O dtype
    #   + ~5 simultaneous f32 temporaries inside the kernel.
    per_elem = 8 * itemsize + 20
    best = None
    for ct in ct_opts:
        for tb in _divisors(n):
            live = tb * ct * hw * per_elem
            if live > _LIVE_BYTES_BUDGET:
                continue
            steps = (n // tb) * (c // ct + c2 // ct)
            # Prefer >= 4 grid steps (pipeline overlap / megacore), then the
            # largest block that fits (amortizes per-step overhead).
            key = (steps >= 4, tb * ct)
            if best is None or key > best[0]:
                best = (key, (ct, tb, live))
    if best is None:
        # Even the smallest aligned tile exceeds the budget (huge HW); take it
        # anyway and let the caller raise the scoped-VMEM limit.
        ct = ct_opts[0]
        return ct, 1, ct * hw * per_elem
    return best[1]


def _plan_batch_tiles(n, c, c2, hw, itemsize):
    """Return (tb, live_bytes) for the full-channel fallback path."""
    # Per batch row and step: double-buffered dtype blocks (x1, x2, out1, out2)
    # plus ~6 simultaneous f32 temporaries over the larger of the two stages.
    per_batch = hw * (2 * (2 * c + c2 + (c + c2)) * itemsize + 24 * max(c, c2))
    tb = 1
    for cand in _divisors(n):
        if cand * per_batch > _LIVE_BYTES_BUDGET:
            break
        min_steps = 4 if n >= 4 else min(n, 2)
        if n // cand < min_steps:
            continue
        tb = cand
    return tb, tb * per_batch


def _compiler_params(dim_sem, live_bytes):
    kwargs = dict(dimension_semantics=dim_sem)
    if live_bytes > 12 * 1024 * 1024:
        # Raise the scoped-VMEM limit, but never past ~75% of the *physical*
        # VMEM of this chip generation (64 MiB on v7x, 128 MiB on v5e/v6e).
        cap = _vmem_capacity_bytes() * 3 // 4
        kwargs["vmem_limit_bytes"] = int(min(max(live_bytes + (8 << 20), 32 << 20), cap))
    return pltpu.CompilerParams(**kwargs)


# ---------------------------------------------------------------------------
# Public wrapper
# ---------------------------------------------------------------------------
def nam_forward(x1, x2):
    """Pallas implementation of NAM.forward.

    x1: (N, C, H, W), x2: (N, C2, H, W) with matching N, H, W.
    Returns (out1: (N, C, H, W), out2: (N, C + C2, H, W)).
    """
    n, c, h, w = x1.shape
    n2, c2, h2, w2 = x2.shape
    assert (n, h, w) == (n2, h2, w2), "x1/x2 must share batch and spatial dims"
    assert x1.dtype == x2.dtype, "x1/x2 must share a dtype"
    hw = h * w
    ctot = c + c2

    x1_3 = x1.reshape(n, c, hw)
    x2_3 = x2.reshape(n, c2, hw)
    itemsize = jnp.dtype(x1.dtype).itemsize

    out_shape = (
        jax.ShapeDtypeStruct((n, c, hw), x1.dtype),
        jax.ShapeDtypeStruct((n, ctot, hw), x1.dtype),
    )

    plan = _plan_channel_tiles(n, c, c2, hw, itemsize)
    if plan is not None:
        # ---- channel-tiled path: grid walks (batch tile, out2 channel block) ----
        ct, tb, live = plan
        j1 = c // ct                       # number of head (x1-derived) blocks
        grid = (n // tb, j1 + c2 // ct)

        # Head steps keep the x2 block parked at (i, 0); tail steps keep the x1
        # block parked at (i, j1-1).  Unchanged consecutive block indices are
        # not re-fetched / re-written, so there is no extra HBM traffic.
        x1_map = lambda i, j: (i, jnp.minimum(j, j1 - 1), 0)
        x2_map = lambda i, j: (i, jnp.maximum(j - j1, 0), 0)

        out1_3, out2_3 = pl.pallas_call(
            _make_split_kernel(j1),
            out_shape=out_shape,
            grid_spec=pltpu.PrefetchScalarGridSpec(
                num_scalar_prefetch=0,
                grid=grid,
                in_specs=[
                    pl.BlockSpec((tb, ct, hw), x1_map),
                    pl.BlockSpec((tb, ct, hw), x2_map),
                ],
                out_specs=[
                    pl.BlockSpec((tb, ct, hw), x1_map),
                    pl.BlockSpec((tb, ct, hw), lambda i, j: (i, j, 0)),
                ],
            ),
            # out1 blocks are revisited along the channel axis -> "arbitrary";
            # batch axis is embarrassingly parallel (megacore).
            compiler_params=_compiler_params(("parallel", "arbitrary"), live),
        )(x1_3, x2_3)
    else:
        # ---- fallback path: full-channel blocks, batch-only grid ----
        tb, live = _plan_batch_tiles(n, c, c2, hw, itemsize)
        grid = (n // tb,)
        out1_3, out2_3 = pl.pallas_call(
            _nam_fullc_kernel,
            out_shape=out_shape,
            grid_spec=pltpu.PrefetchScalarGridSpec(
                num_scalar_prefetch=0,
                grid=grid,
                in_specs=[
                    pl.BlockSpec((tb, c, hw), lambda i: (i, 0, 0)),
                    pl.BlockSpec((tb, c2, hw), lambda i: (i, 0, 0)),
                ],
                out_specs=[
                    pl.BlockSpec((tb, c, hw), lambda i: (i, 0, 0)),
                    pl.BlockSpec((tb, ctot, hw), lambda i: (i, 0, 0)),
                ],
            ),
            compiler_params=_compiler_params(("parallel",), live),
        )(x1_3, x2_3)

    return out1_3.reshape(n, c, h, w), out2_3.reshape(n, ctot, h, w)


# ---------------------------------------------------------------------------
# Reference + self-test
# ---------------------------------------------------------------------------
def _reference(x1, x2):
    """Pure-JAX reference mirroring the PyTorch module literally."""
    def inorm(x):
        mean = jnp.mean(x, axis=(2, 3), keepdims=True)
        var = jnp.mean((x - mean) ** 2, axis=(2, 3), keepdims=True)
        return (x - mean) / jnp.sqrt(var + EPS)

    x1n = inorm(x1)
    out1 = jax.nn.sigmoid(x1n) * x1
    xcat = jnp.concatenate([x1n, x2], axis=1)
    xcn = inorm(xcat)
    return out1, jax.nn.sigmoid(xcn) * xcn


def _check(x1, x2):
    out1, out2 = jax.jit(nam_forward)(x1, x2)
    jax.block_until_ready((out1, out2))
    r1, r2 = _reference(x1, x2)
    assert out1.shape == r1.shape and out2.shape == r2.shape
    assert jnp.allclose(out1, r1, atol=5e-5, rtol=5e-5), float(jnp.max(jnp.abs(out1 - r1)))
    assert jnp.allclose(out2, r2, atol=5e-5, rtol=5e-5), float(jnp.max(jnp.abs(out2 - r2)))


if __name__ == "__main__":
    key = jax.random.PRNGKey(0)
    k1, k2, k3, k4 = jax.random.split(key, 4)

    # Module-sized demo: C=4 is not sublane aligned -> full-channel fallback path.
    N, C, H, W = 2, 4, 16, 16
    _check(jax.random.normal(k1, (N, C, H, W), dtype=jnp.float32),
           jax.random.normal(k2, (N, C, H, W), dtype=jnp.float32))

    # Sublane-aligned channels with C != C2 -> exercises the channel-tiled grid path.
    _check(jax.random.normal(k3, (2, 16, 16, 16), dtype=jnp.float32),
           jax.random.normal(k4, (2, 8, 16, 16), dtype=jnp.float32))

    print("KERNEL_OK")
</pallas_src>

<mosaic_0001>
module attributes {stable_mosaic.version = 11 : i64} {
  func.func @_nam_fullc_kernel(%arg0: i32, %arg1: memref<1x4x256xf32, #tpu.memory_space<vmem>>, %arg2: memref<1x4x256xf32, #tpu.memory_space<vmem>>, %arg3: memref<1x4x256xf32, #tpu.memory_space<vmem>>, %arg4: memref<1x8x256xf32, #tpu.memory_space<vmem>>) attributes {dimension_semantics = [#tpu.dimension_semantics<parallel>], iteration_bounds = array<i64: 2>, scalar_prefetch = 0 : i64, scratch_operands = 0 : i64, tpu.core_type = #tpu.core_type<tc>, window_params = [{transform_indices = @transform_0, window_bounds = array<i64: 1, 4, 256>}, {transform_indices = @transform_1, window_bounds = array<i64: 1, 4, 256>}, {transform_indices = @transform_2, window_bounds = array<i64: 1, 4, 256>}, {transform_indices = @transform_3, window_bounds = array<i64: 1, 8, 256>}]} {
    %c0 = arith.constant 0 : index
    %c0_0 = arith.constant 0 : index
    %c0_1 = arith.constant 0 : index
    %0 = vector.load %arg1[%c0, %c0_0, %c0_1] : memref<1x4x256xf32, #tpu.memory_space<vmem>>, vector<1x4x256xf32>
    %cst = arith.constant dense<0.000000e+00> : vector<1x4xf32>
    %1 = vector.multi_reduction <add>, %0, %cst [2] : vector<1x4x256xf32> to vector<1x4xf32>
    %2 = vector.shape_cast %1 : vector<1x4xf32> to vector<1x4x1xf32>
    %cst_2 = arith.constant 3.906250e-03 : f32
    %3 = vector.broadcast %cst_2 : f32 to vector<1x4x1xf32>
    %4 = arith.mulf %2, %3 : vector<1x4x1xf32>
    %5 = vector.broadcast %4 : vector<1x4x1xf32> to vector<1x4x256xf32>
    %6 = arith.subf %0, %5 : vector<1x4x256xf32>
    %7 = arith.mulf %6, %6 : vector<1x4x256xf32>
    %cst_3 = arith.constant dense<0.000000e+00> : vector<1x4xf32>
    %8 = vector.multi_reduction <add>, %7, %cst_3 [2] : vector<1x4x256xf32> to vector<1x4xf32>
    %9 = vector.shape_cast %8 : vector<1x4xf32> to vector<1x4x1xf32>
    %cst_4 = arith.constant 3.906250e-03 : f32
    %10 = vector.broadcast %cst_4 : f32 to vector<1x4x1xf32>
    %11 = arith.mulf %9, %10 : vector<1x4x1xf32>
    %cst_5 = arith.constant 9.99999974E-6 : f32
    %12 = vector.broadcast %cst_5 : f32 to vector<1x4x1xf32>
    %13 = arith.addf %11, %12 : vector<1x4x1xf32>
    %14 = math.rsqrt %13 : vector<1x4x1xf32>
    %15 = vector.broadcast %14 : vector<1x4x1xf32> to vector<1x4x256xf32>
    %16 = arith.mulf %6, %15 : vector<1x4x256xf32>
    %cst_6 = arith.constant 0.000000e+00 : f32
    %17 = vector.broadcast %cst_6 : f32 to vector<1x4x256xf32>
    %18 = arith.subf %17, %16 : vector<1x4x256xf32>
    %19 = math.exp %18 : vector<1x4x256xf32>
    %cst_7 = arith.constant 1.000000e+00 : f32
    %20 = vector.broadcast %cst_7 : f32 to vector<1x4x256xf32>
    %21 = arith.addf %20, %19 : vector<1x4x256xf32>
    %cst_8 = arith.constant 1.000000e+00 : f32
    %22 = vector.broadcast %cst_8 : f32 to vector<1x4x256xf32>
    %23 = arith.divf %22, %21 : vector<1x4x256xf32>
    %24 = arith.mulf %23, %0 : vector<1x4x256xf32>
    %cst_9 = arith.constant 1.000010e+00 : f32
    %25 = vector.broadcast %cst_9 : f32 to vector<1x4x1xf32>
    %26 = arith.mulf %11, %25 : vector<1x4x1xf32>
    %cst_10 = arith.constant 1.000000e-10 : f32
    %27 = vector.broadcast %cst_10 : f32 to vector<1x4x1xf32>
    %28 = arith.addf %26, %27 : vector<1x4x1xf32>
    %29 = math.rsqrt %28 : vector<1x4x1xf32>
    %30 = vector.broadcast %29 : vector<1x4x1xf32> to vector<1x4x256xf32>
    %31 = arith.mulf %6, %30 : vector<1x4x256xf32>
    %cst_11 = arith.constant 0.000000e+00 : f32
    %32 = vector.broadcast %cst_11 : f32 to vector<1x4x256xf32>
    %33 = arith.subf %32, %31 : vector<1x4x256xf32>
    %34 = math.exp %33 : vector<1x4x256xf32>
    %cst_12 = arith.constant 1.000000e+00 : f32
    %35 = vector.broadcast %cst_12 : f32 to vector<1x4x256xf32>
    %36 = arith.addf %35, %34 : vector<1x4x256xf32>
    %cst_13 = arith.constant 1.000000e+00 : f32
    %37 = vector.broadcast %cst_13 : f32 to vector<1x4x256xf32>
    %38 = arith.divf %37, %36 : vector<1x4x256xf32>
    %39 = arith.mulf %38, %31 : vector<1x4x256xf32>
    %c0_14 = arith.constant 0 : index
    %c0_15 = arith.constant 0 : index
    %c0_16 = arith.constant 0 : index
    %40 = vector.load %arg3[%c0_14, %c0_15, %c0_16] : memref<1x4x256xf32, #tpu.memory_space<vmem>>, vector<1x4x256xf32>
    tpu.vector_store %arg3[%c0_14, %c0_15, %c0_16], %24 {strides = array<i32>} : memref<1x4x256xf32, #tpu.memory_space<vmem>>, vector<1x4x256xf32>,
    %c0_17 = arith.constant 0 : index
    %c0_18 = arith.constant 0 : index
    %c0_19 = arith.constant 0 : index
    %41 = vector.load %arg4[%c0_17, %c0_18, %c0_19] : memref<1x8x256xf32, #tpu.memory_space<vmem>>, vector<1x4x256xf32>
    tpu.vector_store %arg4[%c0_17, %c0_18, %c0_19], %39 {strides = array<i32>} : memref<1x8x256xf32, #tpu.memory_space<vmem>>, vector<1x4x256xf32>,
    %c0_20 = arith.constant 0 : index
    %c0_21 = arith.constant 0 : index
    %c0_22 = arith.constant 0 : index
    %42 = vector.load %arg2[%c0_20, %c0_21, %c0_22] : memref<1x4x256xf32, #tpu.memory_space<vmem>>, vector<1x4x256xf32>
    %cst_23 = arith.constant dense<0.000000e+00> : vector<1x4xf32>
    %43 = vector.multi_reduction <add>, %42, %cst_23 [2] : vector<1x4x256xf32> to vector<1x4xf32>
    %44 = vector.shape_cast %43 : vector<1x4xf32> to vector<1x4x1xf32>
    %cst_24 = arith.constant 3.906250e-03 : f32
    %45 = vector.broadcast %cst_24 : f32 to vector<1x4x1xf32>
    %46 = arith.mulf %44, %45 : vector<1x4x1xf32>
    %47 = vector.broadcast %46 : vector<1x4x1xf32> to vector<1x4x256xf32>
    %48 = arith.subf %42, %47 : vector<1x4x256xf32>
    %49 = arith.mulf %48, %48 : vector<1x4x256xf32>
    %cst_25 = arith.constant dense<0.000000e+00> : vector<1x4xf32>
    %50 = vector.multi_reduction <add>, %49, %cst_25 [2] : vector<1x4x256xf32> to vector<1x4xf32>
    %51 = vector.shape_cast %50 : vector<1x4xf32> to vector<1x4x1xf32>
    %cst_26 = arith.constant 3.906250e-03 : f32
    %52 = vector.broadcast %cst_26 : f32 to vector<1x4x1xf32>
    %53 = arith.mulf %51, %52 : vector<1x4x1xf32>
    %cst_27 = arith.constant 9.99999974E-6 : f32
    %54 = vector.broadcast %cst_27 : f32 to vector<1x4x1xf32>
    %55 = arith.addf %53, %54 : vector<1x4x1xf32>
    %56 = math.rsqrt %55 : vector<1x4x1xf32>
    %57 = vector.broadcast %56 : vector<1x4x1xf32> to vector<1x4x256xf32>
    %58 = arith.mulf %48, %57 : vector<1x4x256xf32>
    %cst_28 = arith.constant 0.000000e+00 : f32
    %59 = vector.broadcast %cst_28 : f32 to vector<1x4x256xf32>
    %60 = arith.subf %59, %58 : vector<1x4x256xf32>
    %61 = math.exp %60 : vector<1x4x256xf32>
    %cst_29 = arith.constant 1.000000e+00 : f32
    %62 = vector.broadcast %cst_29 : f32 to vector<1x4x256xf32>
    %63 = arith.addf %62, %61 : vector<1x4x256xf32>
    %cst_30 = arith.constant 1.000000e+00 : f32
    %64 = vector.broadcast %cst_30 : f32 to vector<1x4x256xf32>
    %65 = arith.divf %64, %63 : vector<1x4x256xf32>
    %66 = arith.mulf %65, %58 : vector<1x4x256xf32>
    %c0_31 = arith.constant 0 : index
    %c4 = arith.constant 4 : index
    %c0_32 = arith.constant 0 : index
    %67 = vector.load %arg4[%c0_31, %c4, %c0_32] : memref<1x8x256xf32, #tpu.memory_space<vmem>>, vector<1x4x256xf32>
    tpu.vector_store %arg4[%c0_31, %c4, %c0_32], %66 {strides = array<i32>} : memref<1x8x256xf32, #tpu.memory_space<vmem>>, vector<1x4x256xf32>,
    return
  }
  func.func @transform_0(%arg0: i32) -> (i32, i32, i32) {
    %c0_i32 = arith.constant 0 : i32
    %c0_i32_0 = arith.constant 0 : i32
    %c0_i32_1 = arith.constant 0 : i32
    return %arg0, %c0_i32, %c0_i32_0 : i32, i32, i32
  }
  func.func @transform_1(%arg0: i32) -> (i32, i32, i32) {
    %c0_i32 = arith.constant 0 : i32
    %c0_i32_0 = arith.constant 0 : i32
    %c0_i32_1 = arith.constant 0 : i32
    return %arg0, %c0_i32, %c0_i32_0 : i32, i32, i32
  }
  func.func @transform_2(%arg0: i32) -> (i32, i32, i32) {
    %c0_i32 = arith.constant 0 : i32
    %c0_i32_0 = arith.constant 0 : i32
    %c0_i32_1 = arith.constant 0 : i32
    return %arg0, %c0_i32, %c0_i32_0 : i32, i32, i32
  }
  func.func @transform_3(%arg0: i32) -> (i32, i32, i32) {
    %c0_i32 = arith.constant 0 : i32
    %c0_i32_0 = arith.constant 0 : i32
    %c0_i32_1 = arith.constant 0 : i32
    return %arg0, %c0_i32, %c0_i32_0 : i32, i32, i32
  }
}

</mosaic_0001>

<bundles_post_ra>
// kernel: nam_forward.1
= control target key start
LH: loop header
LB: loop body
LE: loop exit
PB: predicated region body
PF: predicated region fallthrough
CT: control target
= control target key end

     0   :  { %s511_s12 = smov 0   ;;  %s558_s0 = inlined_call_operand.vmem [shape: f32[2,4,256], index: 0, kind: input, shape index: {}]   ;;  %s559_s1 = inlined_call_operand.vmem [shape: f32[2,4,256], index: 1, kind: input, shape index: {}]   ;;  %s560_s2 = inlined_call_operand.vmem [shape: f32[2,4,256], index: 2, kind: output, shape index: {0}]   ;;  %s561_s3 = inlined_call_operand.vmem [shape: f32[2,8,256], index: 3, kind: output, shape index: {1}]  }
   0x1 LB: > { %s434_s13 = sadd.s32 4294967295, %s488_s12   ;;  %p438_p0 = scmp.ge.s32.totalorder %s488_s12, 1  ;;  %s488_s12 = sphi %s511_s12, %s14_s12  }
   0x2   : > { %p150_p1 = scmp.lt.s32.totalorder %s488_s12, 3 }
   0x4   : > { %p151_p2 = pnand %p438_p0, %p150_p1 }
   0x5   : > { %p184_p3 = scmp.lt.s32.totalorder (!%p151_p2), %s434_s13, 1 }
   0x6   : > { %154 = sbr.rel (%p151_p2) target bundleno = 374 (0x176), region = 28 }
   0xb   : > { %s563_s13 = smov (!%p184_p3, %s434_s13), 1  ;;  %vm208_vm0 = vcmask 1043456   ;;  %v490_v10 = vmov 839922192   ;;  %v219_v12 = vlaneseq }
   0xc   : > { %s522_s14 = sshll.u32 %s563_s13, 3  ;;  %v217_v11 = vunpack.c.l.s4 %v490_v10  ;;  %s452_s21 = sshll.u32 %s563_s13, 4 }
   0xd   : > { %s188_s17 = scalar_lea.vmem %s558_s0, %s522_s14  ;;  %s193_s20 = scalar_lea.vmem %s559_s1, %s522_s14  ;;  %v220_v14 = vshrl.u32 %v219_v12, 7 }
   0xe   : > { %v528_v0 = vld [vmem:[%s188_s17] sm:$0xff]  ;;  %v218_v13 = vunpack.c.0.s8 %v217_v11  ;;  %s198_s24 = scalar_lea.vmem %s560_s2, %s522_s14  ;;  %s203_s27 = scalar_lea.vmem %s561_s3, %s452_s21 }
   0xf   : > { %v206_v1 = vcombine.high %v528_v0, %v528_v0  ;;  %v209_v2 = vsel %vm208_vm0, %v528_v0, 0.0  ;;  %v280_v3 = vld [vmem:[%s193_s20] sm:$0xff] }
  0x10   : > { %v282_v4 = vcombine.high %v280_v3, %v280_v3  ;;  %v284_v6 = vsel %vm208_vm0, %v280_v3, 0.0  ;;  %v221_v15 = vsub.s32 %v218_v13, %v220_v14 }
  0x11   : > { %v210_v5 = vsel %vm208_vm0, %v206_v1, 0.0 }
  0x12   : > { %v211_v7 = vadd.f32 %v210_v5, %v209_v2  ;;  %v285_v8 = vsel %vm208_vm0, %v282_v4, 0.0 }
  0x13   : > { %v286_v9 = vadd.f32 %v285_v8, %v284_v6 }
  0x14   : > { %212 = vadd.xlane.f32.xlu0 %v211_v7 }
  0x18   : > { %287 = vadd.xlane.f32.xlu0 %v286_v9 }
  0x9d   : > { %v213_v16 = vpop.xlane.xlu0 %212 }
  0x9e   : > { %v214_v17 = vmul.f32 0.00390625, %v213_v16 }
  0xa0   : > { %v222_v18 = vrot.slane %v214_v17, %v221_v15 }
  0xa1   : > { %v288_v19 = vpop.xlane.xlu0 %287 }
  0xa2   : > { %v224_v20 = vsub.f32 %v528_v0, %v222_v18  ;;  %v289_v21 = vmul.f32 0.00390625, %v288_v19 }
  0xa4   : > { %v297_v22 = vrot.slane %v289_v21, %v221_v15  ;;  %v225_v23 = vmul.f32 %v224_v20, %v224_v20 }
  0xa6   : > { %v299_v24 = vsub.f32 %v280_v3, %v297_v22  ;;  %v227_v25 = vcombine.high %v225_v23, %v225_v23  ;;  %v229_v26 = vsel %vm208_vm0, %v225_v23, 0.0 }
  0xa8   : > { %v230_v27 = vsel %vm208_vm0, %v227_v25, 0.0  ;;  %v300_v28 = vmul.f32 %v299_v24, %v299_v24 }
  0xa9   : > { %v231_v29 = vadd.f32 %v230_v27, %v229_v26 }
  0xaa   : > { %v302_v30 = vcombine.high %v300_v28, %v300_v28  ;;  %v304_v31 = vsel %vm208_vm0, %v300_v28, 0.0 }
  0xab   : > { %232 = vadd.xlane.f32.xlu1 %v231_v29 }
  0xac   : > { %v305_v32 = vsel %vm208_vm0, %v302_v30, 0.0 }
  0xad   : > { %v306_v33 = vadd.f32 %v305_v32, %v304_v31 }
  0xaf   : > { %307 = vadd.xlane.f32.xlu1 %v306_v33 }
 0x134   : > { %v233_v34 = vpop.xlane.xlu1 %232 }
 0x135   : > { %v234_v35 = vmul.f32 0.00390625, %v233_v34 }
 0x137   : > { %v235_v36 = vadd.f32 1e-05, %v234_v35  ;;  %v254_v37 = vmul.f32 1.00001, %v234_v35 }
 0x138   : > { %v308_v38 = vpop.xlane.xlu1 %307 }
 0x139   : > { %464 = vrsqrt.f32 %v235_v36  ;;  %v255_v39 = vadd.f32 1e-10, %v254_v37  ;;  %v309_v40 = vmul.f32 0.00390625, %v308_v38 }
 0x13b   : > { %466 = vrsqrt.f32 %v255_v39  ;;  %v310_v41 = vadd.f32 1e-05, %v309_v40 }
 0x13d   : > { %468 = vrsqrt.f32 %v310_v41 }
 0x146   : > { %v465_v42 = vpop.eup %464 }
 0x147   : > { %v244_v43 = vrot.slane %v465_v42, %v221_v15 }
 0x148   : > { %v467_v44 = vpop.eup %466 }
 0x149   : > { %v246_v45 = vmul.f32 %v244_v43, %v224_v20  ;;  %v264_v46 = vrot.slane %v467_v44, %v221_v15 }
 0x14a   : > { %v469_v47 = vpop.eup %468 }
 0x14b   : > { %v247_v48 = vsub.f32 0.0, %v246_v45  ;;  %v266_v49 = vmul.f32 %v264_v46, %v224_v20  ;;  %v319_v50 = vrot.slane %v469_v47, %v221_v15 }
 0x14d   : > { %v248_v51 = vmul.f32 1.442695, %v247_v48  ;;  %v267_v52 = vsub.f32 0.0, %v266_v49  ;;  %v321_v53 = vmul.f32 %v319_v50, %v299_v24 }
 0x14f   : > { %470 = vpow2.f32 %v248_v51  ;;  %v268_v54 = vmul.f32 1.442695, %v267_v52  ;;  %v322_v55 = vsub.f32 0.0, %v321_v53 }
 0x151   : > { %472 = vpow2.f32 %v268_v54  ;;  %v323_v56 = vmul.f32 1.442695, %v322_v55 }
 0x153   : > { %474 = vpow2.f32 %v323_v56 }
 0x15c   : > { %v471_v57 = vpop.eup %470 }
 0x15d   : > { %v250_v58 = vadd.f32 1.0, %v471_v57 }
 0x15e   : > { %v473_v59 = vpop.eup %472 }
 0x15f   : > { %476 = vrcp.f32 %v250_v58  ;;  %v270_v60 = vadd.f32 1.0, %v473_v59 }
 0x160   : > { %v475_v61 = vpop.eup %474 }
 0x161   : > { %478 = vrcp.f32 %v270_v60  ;;  %v325_v62 = vadd.f32 1.0, %v475_v61 }
 0x163   : > { %480 = vrcp.f32 %v325_v62 }
 0x16c   : > { %v477_v63 = vpop.eup %476 }
 0x16d   : > { %v253_v1 = vmul.f32 %v477_v63, %v528_v0 }
 0x16e   : > { %v479_v2 = vpop.eup %478 }
 0x16f   : > { %v273_v3 = vmul.f32 %v479_v2, %v266_v49  ;;  %274 = vst [vmem:[%s198_s24] sm:$0xff] %v253_v1 }
 0x170   : > { %v481_v4 = vpop.eup %480 }
 0x171   : > { %v276_v5 = vcombine.high %v273_v3, %v273_v3  ;;  %278 = vst [vmem:[%s203_s27] sm:$0xf] %v273_v3  ;;  %v328_v6 = vmul.f32 %v481_v4, %v321_v53 }
 0x173   : > { %279 = vst [vmem:[%s203_s27 + $0x8] sm:$0xf] %v276_v5  ;;  %v330_v7 = vcombine.low %v328_v6, %v328_v6  ;;  %333 = vst [vmem:[%s203_s27 + $0x8] sm:$0xf0] %v328_v6 }
 0x175   : > { %332 = vst [vmem:[%s203_s27] sm:$0xf0] %v330_v7 }
 0x176 PF: > { %s14_s12 = sadd.s32 1, %s488_s12  }
 0x177   : > { %p11_p4 = scmp.ge.s32.totalorder %s14_s12, 4  }
 0x179   :  { %13 = sbr.rel (!%p11_p4) target bundleno = 1 (0x1), region = 73 }

</bundles_post_ra>
